<compile_context>
chip_gen: v5e
topology: v5e:2x2
jax: 0.10.0
libtpu: 0.0.40
codegen_flags: <defaults>
</compile_context>

<pallas_src>
import functools

import jax
import jax.numpy as jnp
from jax.experimental import pallas as pl
from jax.experimental.pallas import tpu as pltpu

EPS = 1e-3


def _round_up(x, m):
    return (x + m - 1) // m * m


# ---------------------------------------------------------------------------
# Pass 1: stats-only (per-core partial BN batch statistics), no Y written
# ---------------------------------------------------------------------------
def _stats_kernel(p_ref, w_ref, sum_ref, sq_ref):
    # p_ref:   (k_pad, tile_m)      bf16 transposed patch tile
    # w_ref:   (cout_pad, k_pad)    bf16 weights (resident, constant index)
    # sum_ref: (cout_pad, 1) f32    per-core resident accumulator (sum over M)
    # sq_ref:  (cout_pad, 1) f32    per-core resident accumulator (sum of squares)
    @pl.when(pl.program_id(1) == 0)
    def _():
        sum_ref[...] = jnp.zeros_like(sum_ref)
        sq_ref[...] = jnp.zeros_like(sq_ref)

    y = jnp.dot(w_ref[...], p_ref[...], preferred_element_type=jnp.float32)  # (cout_pad, tile_m)
    sum_ref[...] += jnp.sum(y, axis=1, keepdims=True)
    sq_ref[...] += jnp.sum(y * y, axis=1, keepdims=True)


# ---------------------------------------------------------------------------
# Pass 2: recompute conv matmul, fold BN (training-mode batch stats) + ReLU
# ---------------------------------------------------------------------------
def _conv_bn_relu_kernel(p_ref, w_ref, sum_ref, sq_ref, gamma_ref, beta_ref, o_ref,
                         *, inv_m, n_cores, cout_pad):
    # Reduce per-core partial statistics (n_cores is a small static int).
    s_all = sum_ref[...]                       # (n_cores*cout_pad, 1)
    q_all = sq_ref[...]
    s = s_all[0:cout_pad]
    q = q_all[0:cout_pad]
    for c in range(1, n_cores):
        s = s + s_all[c * cout_pad:(c + 1) * cout_pad]
        q = q + q_all[c * cout_pad:(c + 1) * cout_pad]

    mean = s * inv_m                           # (cout_pad, 1), f32
    var = jnp.maximum(q * inv_m - mean * mean, 0.0)   # biased batch variance
    scale = gamma_ref[...] * jax.lax.rsqrt(var + EPS)
    bias = beta_ref[...] - mean * scale

    y = jnp.dot(w_ref[...], p_ref[...], preferred_element_type=jnp.float32)  # (cout_pad, tile_m)
    o_ref[...] = jnp.maximum(y * scale + bias, 0.0).astype(o_ref.dtype)


# ---------------------------------------------------------------------------
# Host-side transposed im2col (K, M).  K index = cin*KH*KW + kh*KW + kw matches
# conv_weight.reshape(Cout, K), so no weight transpose is needed.
# ---------------------------------------------------------------------------
def _im2col_t_nchw(x, kh, kw, stride, padding):
    n, c, h, w = x.shape
    xp = jnp.pad(x, ((0, 0), (0, 0), (padding, padding), (padding, padding)))
    oh = (h + 2 * padding - kh) // stride + 1
    ow = (w + 2 * padding - kw) // stride + 1
    slices = []
    for i in range(kh):
        for j in range(kw):
            slices.append(xp[:, :, i:i + stride * oh:stride, j:j + stride * ow:stride])
    stacked = jnp.stack(slices, axis=0).reshape(kh, kw, n, c, oh, ow)
    pt = jnp.transpose(stacked, (3, 0, 1, 2, 4, 5))        # (C, KH, KW, N, OH, OW)
    return pt.reshape(c * kh * kw, n * oh * ow), oh, ow


# ---------------------------------------------------------------------------
# Wrapper
# ---------------------------------------------------------------------------
def basic_conv_forward(x, conv_weight, bn_gamma, bn_beta, *, stride, padding, tile_m=1024):
    """x: (N, Cin, H, W) NCHW; conv_weight: (Cout, Cin, KH, KW). Returns NCHW f32."""
    n, cin, h, w = x.shape
    cout, _, kh, kw = conv_weight.shape
    k = cin * kh * kw

    # im2col in bf16 (MXU operands are bf16; halves intermediate HBM traffic).
    patches_t, oh, ow = _im2col_t_nchw(x.astype(jnp.bfloat16), kh, kw, stride, padding)
    m = n * oh * ow

    # Padding / tiling: Cout only to 8 sublanes, K to a multiple of 64 (MXU contraction),
    # M tiles to a multiple of 256 (lane axis, v6e/v7x MXU feed).
    cout_pad = _round_up(cout, 8)
    k_pad = _round_up(k, 64)
    tile_m = _round_up(max(256, min(tile_m, m)), 256)

    n_cores = 2 if (m + tile_m - 1) // tile_m >= 2 else 1   # v7x megacore split (harmless on 1-TC chips)
    tiles_per_core = -(-m // (tile_m * n_cores))
    m_pad = n_cores * tiles_per_core * tile_m
    m_tiles = m_pad // tile_m

    patches_p = jnp.zeros((k_pad, m_pad), jnp.bfloat16).at[:k, :m].set(patches_t)
    w_p = jnp.zeros((cout_pad, k_pad), jnp.bfloat16).at[:cout, :k].set(
        conv_weight.reshape(cout, k).astype(jnp.bfloat16))
    gamma_p = jnp.ones((cout_pad, 1), jnp.float32).at[:cout, 0].set(bn_gamma.astype(jnp.float32))
    beta_p = jnp.zeros((cout_pad, 1), jnp.float32).at[:cout, 0].set(bn_beta.astype(jnp.float32))

    # VMEM: actual double-buffered footprint + headroom, capped well under v7x's 64 MiB.
    block_bytes = k_pad * tile_m * 2 + cout_pad * tile_m * 4 + cout_pad * k_pad * 2
    vmem_limit = int(min(max(4 * block_bytes + (2 << 20), 8 << 20), 48 << 20))

    # -------- pass 1: per-core partial BN batch statistics (no Y output) --------
    s_sum, s_sq = pl.pallas_call(
        _stats_kernel,
        out_shape=(
            jax.ShapeDtypeStruct((n_cores * cout_pad, 1), jnp.float32),   # partial sum(Y)
            jax.ShapeDtypeStruct((n_cores * cout_pad, 1), jnp.float32),   # partial sum(Y^2)
        ),
        grid=(n_cores, tiles_per_core),
        in_specs=[
            pl.BlockSpec((k_pad, tile_m), lambda c, i: (0, c * tiles_per_core + i)),
            pl.BlockSpec((cout_pad, k_pad), lambda c, i: (0, 0)),          # weights resident
        ],
        out_specs=(
            pl.BlockSpec((cout_pad, 1), lambda c, i: (c, 0)),              # per-core accumulator
            pl.BlockSpec((cout_pad, 1), lambda c, i: (c, 0)),
        ),
        compiler_params=pltpu.CompilerParams(
            dimension_semantics=("parallel", "arbitrary"),
            vmem_limit_bytes=vmem_limit,
        ),
    )(patches_p, w_p)

    # -------- pass 2: recompute matmul, normalize + affine + ReLU --------
    out_t = pl.pallas_call(
        functools.partial(_conv_bn_relu_kernel,
                          inv_m=1.0 / float(m), n_cores=n_cores, cout_pad=cout_pad),
        out_shape=jax.ShapeDtypeStruct((cout_pad, m_pad), jnp.float32),
        grid=(m_tiles,),
        in_specs=[
            pl.BlockSpec((k_pad, tile_m), lambda i: (0, i)),
            pl.BlockSpec((cout_pad, k_pad), lambda i: (0, 0)),
            pl.BlockSpec((n_cores * cout_pad, 1), lambda i: (0, 0)),
            pl.BlockSpec((n_cores * cout_pad, 1), lambda i: (0, 0)),
            pl.BlockSpec((cout_pad, 1), lambda i: (0, 0)),
            pl.BlockSpec((cout_pad, 1), lambda i: (0, 0)),
        ],
        out_specs=pl.BlockSpec((cout_pad, tile_m), lambda i: (0, i)),
        compiler_params=pltpu.CompilerParams(
            dimension_semantics=("parallel",),                             # megacore-shardable
            vmem_limit_bytes=vmem_limit,
        ),
    )(patches_p, w_p, s_sum, s_sq, gamma_p, beta_p)

    # (Cout, M) is already channel-major: only a cheap leading-axis swap remains.
    out = out_t[:cout, :m].reshape(cout, n, oh, ow).transpose(1, 0, 2, 3)
    return out


# ---------------------------------------------------------------------------
# Pure-JAX reference (loose sanity check; bf16 matmul operands => ~1e-2 error)
# ---------------------------------------------------------------------------
def _reference(x, w, gamma, beta, stride, padding):
    y = jax.lax.conv_general_dilated(
        x, w, window_strides=(stride, stride),
        padding=[(padding, padding), (padding, padding)],
        dimension_numbers=("NCHW", "OIHW", "NCHW"))
    mean = jnp.mean(y, axis=(0, 2, 3), keepdims=True)
    var = jnp.mean((y - mean) ** 2, axis=(0, 2, 3), keepdims=True)
    yh = (y - mean) * jax.lax.rsqrt(var + EPS)
    yh = yh * gamma.reshape(1, -1, 1, 1) + beta.reshape(1, -1, 1, 1)
    return jnp.maximum(yh, 0.0)


if __name__ == "__main__":
    # Module config: BasicConv(in_chan=4, out_chan=8, kernel_size=3, stride=1, padding=1)
    N, CIN, H, W = 2, 4, 16, 16
    COUT, KH, KW = 8, 3, 3
    STRIDE, PADDING = 1, 1

    key = jax.random.PRNGKey(0)
    kx, kw_ = jax.random.split(key)
    x = jax.random.normal(kx, (N, CIN, H, W), dtype=jnp.float32)
    conv_weight = jax.random.normal(kw_, (COUT, CIN, KH, KW), dtype=jnp.float32) * 0.1
    # BatchNorm2d affine params at PyTorch defaults: gamma=1, beta=0
    bn_gamma = jnp.ones((COUT,), dtype=jnp.float32)
    bn_beta = jnp.zeros((COUT,), dtype=jnp.float32)

    # tile_m=256 at this toy M=512 exercises the 2-way per-core stat split and multi-tile
    # pipelining; production default is tile_m=1024.
    out = basic_conv_forward(x, conv_weight, bn_gamma, bn_beta,
                             stride=STRIDE, padding=PADDING, tile_m=256)
    out = jax.block_until_ready(out)
    assert out.shape == (N, COUT, H, W), out.shape

    ref = jax.block_until_ready(_reference(x, conv_weight, bn_gamma, bn_beta, STRIDE, PADDING))
    max_err = float(jnp.max(jnp.abs(out - ref)))
    assert max_err < 0.1, f"max abs error {max_err} too large"

    print("KERNEL_OK")
</pallas_src>

<mosaic_0001>
module attributes {stable_mosaic.version = 11 : i64} {
  func.func @_stats_kernel(%arg0: i32, %arg1: i32, %arg2: memref<64x256xbf16, #tpu.memory_space<vmem>>, %arg3: memref<8x64xbf16, #tpu.memory_space<vmem>>, %arg4: memref<8x1xf32, #tpu.memory_space<vmem>>, %arg5: memref<8x1xf32, #tpu.memory_space<vmem>>) attributes {dimension_semantics = [#tpu.dimension_semantics<parallel>, #tpu.dimension_semantics<arbitrary>], iteration_bounds = array<i64: 2, 1>, scalar_prefetch = 0 : i64, scratch_operands = 0 : i64, tpu.core_type = #tpu.core_type<tc>, window_params = [{transform_indices = @transform_0, window_bounds = array<i64: 64, 256>}, {pipeline_mode = #tpu.pipeline_mode<synchronous>, transform_indices = @transform_1, window_bounds = array<i64: 8, 64>}, {transform_indices = @transform_2, window_bounds = array<i64: 8, 1>}, {transform_indices = @transform_3, window_bounds = array<i64: 8, 1>}]} {
    %c0_i32 = arith.constant 0 : i32
    %0 = arith.cmpi eq, %arg1, %c0_i32 : i32
    %1 = arith.extui %0 : i1 to i32
    %c0_i32_0 = arith.constant 0 : i32
    %2 = arith.cmpi ne, %1, %c0_i32_0 : i32
    scf.if %2 {
      %cst_14 = arith.constant 0.000000e+00 : f32
      %17 = vector.broadcast %cst_14 : f32 to vector<8x1xf32>
      %c0_15 = arith.constant 0 : index
      %c0_16 = arith.constant 0 : index
      %18 = vector.load %arg4[%c0_15, %c0_16] : memref<8x1xf32, #tpu.memory_space<vmem>>, vector<8x1xf32>
      tpu.vector_store %arg4[%c0_15, %c0_16], %17 {strides = array<i32>} : memref<8x1xf32, #tpu.memory_space<vmem>>, vector<8x1xf32>,
      %cst_17 = arith.constant 0.000000e+00 : f32
      %19 = vector.broadcast %cst_17 : f32 to vector<8x1xf32>
      %c0_18 = arith.constant 0 : index
      %c0_19 = arith.constant 0 : index
      %20 = vector.load %arg5[%c0_18, %c0_19] : memref<8x1xf32, #tpu.memory_space<vmem>>, vector<8x1xf32>
      tpu.vector_store %arg5[%c0_18, %c0_19], %19 {strides = array<i32>} : memref<8x1xf32, #tpu.memory_space<vmem>>, vector<8x1xf32>,
    } else {
    }
    %c0 = arith.constant 0 : index
    %c0_1 = arith.constant 0 : index
    %3 = vector.load %arg3[%c0, %c0_1] : memref<8x64xbf16, #tpu.memory_space<vmem>>, vector<8x64xbf16>
    %c0_2 = arith.constant 0 : index
    %c0_3 = arith.constant 0 : index
    %4 = vector.load %arg2[%c0_2, %c0_3] : memref<64x256xbf16, #tpu.memory_space<vmem>>, vector<64x256xbf16>
    %cst = arith.constant dense<0.000000e+00> : vector<8x256xf32>
    %5 = tpu.matmul %3, %4, %cst {dimension_numbers = #tpu.dot_dimension_numbers<[1], [0], [0], [1], [0, 0, 1, 1], [], []>} : vector<8x64xbf16>, vector<64x256xbf16>, vector<8x256xf32> -> vector<8x256xf32>
    %c0_4 = arith.constant 0 : index
    %c0_5 = arith.constant 0 : index
    %6 = vector.load %arg4[%c0_4, %c0_5] : memref<8x1xf32, #tpu.memory_space<vmem>>, vector<8x1xf32>
    %cst_6 = arith.constant dense<0.000000e+00> : vector<8xf32>
    %7 = vector.multi_reduction <add>, %5, %cst_6 [1] : vector<8x256xf32> to vector<8xf32>
    %8 = vector.shape_cast %7 : vector<8xf32> to vector<8x1xf32>
    %9 = arith.addf %6, %8 : vector<8x1xf32>
    %c0_7 = arith.constant 0 : index
    %c0_8 = arith.constant 0 : index
    %10 = vector.load %arg4[%c0_7, %c0_8] : memref<8x1xf32, #tpu.memory_space<vmem>>, vector<8x1xf32>
    tpu.vector_store %arg4[%c0_7, %c0_8], %9 {strides = array<i32>} : memref<8x1xf32, #tpu.memory_space<vmem>>, vector<8x1xf32>,
    %c0_9 = arith.constant 0 : index
    %c0_10 = arith.constant 0 : index
    %11 = vector.load %arg5[%c0_9, %c0_10] : memref<8x1xf32, #tpu.memory_space<vmem>>, vector<8x1xf32>
    %12 = arith.mulf %5, %5 : vector<8x256xf32>
    %cst_11 = arith.constant dense<0.000000e+00> : vector<8xf32>
    %13 = vector.multi_reduction <add>, %12, %cst_11 [1] : vector<8x256xf32> to vector<8xf32>
    %14 = vector.shape_cast %13 : vector<8xf32> to vector<8x1xf32>
    %15 = arith.addf %11, %14 : vector<8x1xf32>
    %c0_12 = arith.constant 0 : index
    %c0_13 = arith.constant 0 : index
    %16 = vector.load %arg5[%c0_12, %c0_13] : memref<8x1xf32, #tpu.memory_space<vmem>>, vector<8x1xf32>
    tpu.vector_store %arg5[%c0_12, %c0_13], %15 {strides = array<i32>} : memref<8x1xf32, #tpu.memory_space<vmem>>, vector<8x1xf32>,
    return
  }
  func.func @transform_0(%arg0: i32, %arg1: i32) -> (i32, i32) {
    %c1_i32 = arith.constant 1 : i32
    %0 = arith.muli %arg0, %c1_i32 : i32
    %1 = arith.addi %0, %arg1 : i32
    %c0_i32 = arith.constant 0 : i32
    %c0_i32_0 = arith.constant 0 : i32
    return %c0_i32, %1 : i32, i32
  }
  func.func @transform_1(%arg0: i32, %arg1: i32) -> (i32, i32) {
    %c0_i32 = arith.constant 0 : i32
    %c0_i32_0 = arith.constant 0 : i32
    %c0_i32_1 = arith.constant 0 : i32
    return %c0_i32, %c0_i32_0 : i32, i32
  }
  func.func @transform_2(%arg0: i32, %arg1: i32) -> (i32, i32) {
    %c0_i32 = arith.constant 0 : i32
    %c0_i32_0 = arith.constant 0 : i32
    return %arg0, %c0_i32 : i32, i32
  }
  func.func @transform_3(%arg0: i32, %arg1: i32) -> (i32, i32) {
    %c0_i32 = arith.constant 0 : i32
    %c0_i32_0 = arith.constant 0 : i32
    return %arg0, %c0_i32 : i32, i32
  }
}

</mosaic_0001>

<bundles_post_ra>
// kernel: tpu_custom_call.1
= control target key start
LH: loop header
LB: loop body
LE: loop exit
PB: predicated region body
PF: predicated region fallthrough
CT: control target
= control target key end

     0   :  { %9 = vsyncpa [#allocation3], 0  ;;  %s846_s0 = inlined_call_operand.hbm [shape: bf16[64,512], index: 0, kind: input, shape index: {}]   ;;  %s847_s1 = inlined_call_operand.hbm [shape: bf16[8,64], index: 1, kind: input, shape index: {}]   ;;  %s848_s2 = inlined_call_operand.vmem [shape: f32[16,1], index: 2, kind: output, shape index: {0}]   ;;  %s849_s3 = inlined_call_operand.vmem [shape: f32[16,1], index: 3, kind: output, shape index: {1}]  }
   0x1   :  { %11 = vsyncpa [#allocation3 + $0x1], 0 }
   0x2   :  { %12 = vsyncpa [#allocation5], 0  ;;  %s720_s12 = smov 0   ;;  %s722_s13 = smov 0  }
   0x3   :  { %s724_s14 = smov 0   ;;  %s726_s15 = smov 0  }
   0x4   :  { %s728_s16 = smov 0   ;;  %s730_s17 = smov 0  }
   0x5 LB: > { %s451_s18 = sadd.s32 4294967295, %s693_s17   ;;  %s39_s19 = sadd.s32 1, %s681_s14  ;;  %s693_s17 = sphi %s730_s17, %s18_s17   ;;  %s689_s16 = sphi %s728_s16, %s859_s16   ;;  %s685_s15 = sphi %s726_s15, %s858_s15   ;;  %s681_s14 = sphi %s724_s14, %s857_s14   ;;  %s677_s13 = sphi %s722_s13, %s856_s13   ;;  %s673_s12 = sphi %s720_s12, %s855_s12  }
   0x6   : > { %p46_p0 = scmp.ne.s32.totalorder %s681_s14, %s677_s13  ;;  %p47_p1 = scmp.eq.s32.totalorder %s693_s17, 0 }
   0x7   : > { %p52_p2 = scmp.ne.s32.totalorder %s677_s13, %s673_s12  ;;  %p754_p3 = scmp.eq.s32.totalorder %s451_s18, 0 }
   0x8   : > { %p758_p4 = por %p47_p1, %p46_p0  ;;  %p453_p5 = scmp.ge.s32.totalorder %s693_s17, 1 }
   0x9   : > { %p765_p6 = por %p754_p3, %p52_p2  ;;  %p136_p7 = scmp.lt.s32.totalorder %s693_s17, 3 }
   0xa   : > { %s148_s25 = sshll.u32 %s847_s1, 4  ;;  %s695_s27 = smov [#allocation4]   ;;  %s149_s25 = int_to_ptr.hbm [resolvable:$true] %s148_s25 }
   0xb   : > { %p773_p8 = pnand %p453_p5, %p136_p7  ;;  %s150_s28 = sshll.u32 %s695_s27, 4  ;;  %s151_s28 = int_to_ptr.vmem [resolvable:$true] %s150_s28 }
   0xc   : > { %p524_p10 = scmp.lt.s32.totalorder %s693_s17, 2  ;;  %s30_s30 = sadd.s32 1, %s689_s16 }
   0xd   : > { %p515_p9 = pneg %p773_p8  ;;  %p32_p13 = scmp.ge.s32.totalorder %s30_s30, 2 }
   0xe   : > { %p784_p12 = pnand %p524_p10, %p758_p4  ;;  %s161_s4 = sand.u32 1, %s681_s14  }
   0xf   : > { %p516_p11 = pnand %p515_p9, %p754_p3  ;;  %s500_s5 = sshll.u32 %s689_s16, 3 }
  0x10   : > { %s861_s30 = smov (%p32_p13, %s30_s30), 0  ;;  %s456_s6 = sshll.u32 %s161_s4, 6 }
  0x11   : > { %518 = dma.hbm_to_vmem [thread:$0]  (!%p516_p11), %s149_s25, 64, %s151_s28, [#allocation5]  }
  0x12   : > { %s36_s7 = ssub.s32 %s689_s16, %s861_s30  ;;  %s171_s10 = scalar_lea.hbm %s846_s0, %s500_s5 }
  0x13   : > { %p37_p0 = scmp.eq.s32.totalorder %s36_s7, 0  ;;  %s172_s11 = sshll.u32 %s171_s10, 4  ;;  %s173_s11 = int_to_ptr.hbm [resolvable:$true] %s172_s11 }
  0x14   : > { %s165_s12 = scalar_lea.vmem [#allocation2], %s456_s6  ;;  %s162_s23 = scalar_lea.sflag [#allocation3], %s161_s4 }
  0x15   : > { %s174_s18 = sshll.u32 %s165_s12, 4  ;;  %s696_s24 = smov 256   ;;  %s175_s18 = int_to_ptr.vmem [resolvable:$true] %s174_s18 }
  0x16   : > { %s801_s21 = scalar_select %p37_p0, %s681_s14, %s39_s19  }
  0x17   : > { %s697_s25 = smov 128   ;;  %s698_s27 = smov 8  }
  0x18   : > { %522 = dma.hbm_to_vmem [thread:$0]  (!%p784_p12), %s173_s11, 1024, %s175_s18, %s162_s23, %s696_s24, %s697_s25, %s698_s27  }
  0x19   : > { %186 = sbr.rel (%p773_p8) target bundleno = 307 (0x133), region = 28  ;;  %s188_s28 = sand.u32 (!%p773_p8), 1, %s677_s13  }
  0x1a   : > { %s460_s5 = sshll.u32 (!%p773_p8), %s188_s28, 6  ;;  %s189_s6 = scalar_lea.sflag (!%p773_p8), [#allocation3], %s188_s28 }
  0x1b   : > { %s192_s7 = scalar_lea.vmem (!%p773_p8), [#allocation2], %s460_s5 }
  0x1e   : > { %664 = dma.done.wait (%p765_p6), %s189_s6, 1024  }
  0x1f   : > { %666 = vsyncadd (%p765_p6), %s189_s6, 4294966272 }
  0x20   : > { %668 = dma.done.wait (%p754_p3), [#allocation5], 64  }
  0x21   : > { %670 = vsyncadd (%p754_p3), [#allocation5], 4294967232  ;;  %v490_v0 = vld [vmem:[%s192_s7 + $0x30] sm:$0xf]  ;;  %v508_v1 = vld [vmem:[%s192_s7 + $0x34] sm:$0xf0] }
  0x22   : > { %v507_v2 = vld [vmem:[%s192_s7 + $0x34] sm:$0xf]  ;;  %v491_v3 = vor.u32 %v508_v1, %v490_v0  ;;  %v492_v4 = vld [vmem:[%s192_s7 + $0x38] sm:$0xf0]  ;;  %v482_v5 = vld [vmem:[%s192_s7 + $0x20] sm:$0xf] }
  0x23   : > { %v506_v6 = vld [vmem:[%s192_s7 + $0x24] sm:$0xf0]  ;;  %v495_v7 = vor.u32 %v507_v2, %v492_v4  ;;  %v505_v8 = vld [vmem:[%s192_s7 + $0x24] sm:$0xf]  ;;  %v484_v9 = vld [vmem:[%s192_s7 + $0x28] sm:$0xf0] }
  0x24   : > { %299 = vmatpush.bf16.msra.mxu0 %v491_v3  ;;  %v483_v10 = vor.u32 %v506_v6, %v482_v5  ;;  %v487_v11 = vor.u32 %v505_v8, %v484_v9  ;;  %v474_v12 = vld [vmem:[%s192_s7 + $0x10] sm:$0xf]  ;;  %v504_v13 = vld [vmem:[%s192_s7 + $0x14] sm:$0xf0]  ;;  %v503_v14 = vld [vmem:[%s192_s7 + $0x14] sm:$0xf] }
  0x25   : > { %312 = vmatpush.bf16.msra.mxu1 %v495_v7  ;;  %v476_v15 = vld [vmem:[%s192_s7 + $0x18] sm:$0xf0]  ;;  %v475_v16 = vor.u32 %v504_v13, %v474_v12  ;;  %v466_v18 = vld [vmem:[%s192_s7] sm:$0xf]  ;;  %v502_v19 = vld [vmem:[%s192_s7 + $0x4] sm:$0xf0] }
  0x26   : > { %v479_v17 = vor.u32 %v503_v14, %v476_v15  ;;  %v501_v20 = vld [vmem:[%s192_s7 + $0x4] sm:$0xf]  ;;  %v468_v21 = vld [vmem:[%s192_s7 + $0x8] sm:$0xf0]  ;;  %v467_v22 = vor.u32 %v502_v19, %v466_v18  ;;  %v242_v24 = vld [vmem:[#allocation4] sm:$0xf] }
  0x27   : > { %v471_v23 = vor.u32 %v501_v20, %v468_v21  ;;  %vm291_vm0 = vcmask 523264   ;;  %p226_p1 = scmp.lt.s32.totalorder %s685_s15, 1  ;;  %vm239_vm1 = vcmask 7168   ;;  %v699_v25 = vmov 0.0  }
  0x28   : > { %300 = vmatpush.bf16.msra.mxu0 %v483_v10 }
  0x29   : > { %313 = vmatpush.bf16.msra.mxu1 %v487_v11  ;;  %s863_s15 = smov (!%p226_p1, %s685_s15), 1 }
  0x2a   : > { %s462_s19 = sshll.u32 %s863_s15, 3 }
  0x2b   : > { %s229_s26 = scalar_lea.vmem %s848_s2, %s462_s19  ;;  %s233_s8 = scalar_lea.vmem %s849_s3, %s462_s19 }
  0x2c   : > { %301 = vmatpush.bf16.msra.mxu0 %v475_v16  ;;  %240 = vst.msk [vmem:[%s229_s26] sm:$0xff] %vm239_vm1, %v699_v25 }
  0x2d   : > { %314 = vmatpush.bf16.msra.mxu1 %v479_v17  ;;  %241 = vst.msk [vmem:[%s233_s8] sm:$0xff] %vm239_vm1, %v699_v25 }
  0x30   : > { %302 = vmatpush.bf16.msra.mxu0 %v467_v22 }
  0x31   : > { %315 = vmatpush.bf16.msra.mxu1 %v471_v23 }
  0x33   : > { %496 = vmatmul.msk.bf16.vlgmr.msra.gmra.mxu0 %vm291_vm0, %v242_v24  ;;  %v321_v34 = vld [vmem:[%s229_s26] sm:$0xff] }
  0x34   : > { %497 = vmatmul.msk.bf16.vlgmr.msra.gmra.mxu1 %vm291_vm0, %v242_v24  ;;  %v328_v37 = vld [vmem:[%s233_s8] sm:$0xff] }
  0xb0   : > { %v304_v26 = vpop.f32.mrf.mxu0 }
  0xb1   : > { %v317_v27 = vpop.f32.mrf.mxu1  ;;  %v329_v29 = vmul.f32 %v304_v26, %v304_v26 }
  0xb2   : > { %v322_v28 = vadd.f32 %v317_v27, %v304_v26  ;;  %v330_v30 = vmul.f32 %v317_v27, %v317_v27 }
  0xb4   : > { %323 = vadd.xlane.f32.xlu0 %v322_v28  ;;  %v331_v33 = vadd.f32 %v330_v30, %v329_v29 }
  0xb8   : > { %v306_v31 = vpop.f32.mrf.mxu0 }
  0xb9   : > { %v319_v32 = vpop.f32.mrf.mxu1 }
  0xbc   : > { %332 = vadd.xlane.f32.xlu0 %v331_v33 }
 0x127   : > { %v324_v35 = vpop.xlane.xlu0 %323 }
 0x128   : > { %v325_v36 = vadd.f32 %v324_v35, %v321_v34 }
 0x12a   : > { %327 = vst.msk [vmem:[%s229_s26] sm:$0xff] %vm239_vm1, %v325_v36 }
 0x12f   : > { %v333_v38 = vpop.xlane.xlu0 %332 }
 0x130   : > { %v334_v39 = vadd.f32 %v333_v38, %v328_v37 }
 0x132   : > { %335 = vst.msk [vmem:[%s233_s8] sm:$0xff] %vm239_vm1, %v334_v39 }
 0x133 PF: > { %s18_s17 = sadd.s32 1, %s693_s17   ;;  %s855_s12 = smov %s677_s13 }
 0x134   : > { %p15_p2 = scmp.ge.s32.totalorder %s18_s17, 4   ;;  %s856_s13 = smov %s681_s14 }
 0x135   : > { %s857_s14 = smov %s801_s21  ;;  %s858_s15 = smov %s689_s16 }
 0x136   : > { %s859_s16 = smov %s861_s30  ;;  %17 = sbr.rel (!%p15_p2) target bundleno = 5 (0x5), region = 88 }
 0x13b   :  { %369 = vsyncpa [#allocation3], 1 }
 0x13c   :  { %371 = vsyncpa [#allocation3 + $0x1], 1 }
 0x13d   :  { %372 = vsyncpa [#allocation5], 1 }

</bundles_post_ra>
